<compile_context>
chip_gen: v5e
topology: v5e:2x2
jax: 0.10.0
libtpu: 0.0.40
codegen_flags: <defaults>
</compile_context>

<pallas_src>
import functools

import jax
import jax.numpy as jnp
from jax.experimental import pallas as pl
from jax.experimental.pallas import tpu as pltpu

EPS = 1e-8
_LANE = 128


def _round_up(v, m):
    return ((v + m - 1) // m) * m


# ----------------------------------------------------------------------------
# Pallas kernel: (x @ W^T + b) -> projective row L2-normalization -> * scale
# ----------------------------------------------------------------------------
def _hyperbolic_linear_kernel(scale_ref, x_ref, wt_ref, b_ref, o_ref):
    # scale_ref: (1,)      SMEM  uniform cross-ratio restoration scale
    # x_ref    : (tm, Kp)  VMEM  row tile of (zero-padded) input
    # wt_ref   : (Kp, Op)  VMEM  whole pre-transposed/padded weight (grid-invariant)
    # b_ref    : (1, Op)   VMEM  padded f32 bias row (no per-step cast needed)
    # o_ref    : (tm, Op)  VMEM  lane-dense output tile (Op % 128 == 0)
    acc = jnp.dot(x_ref[...], wt_ref[...], preferred_element_type=jnp.float32)
    acc = acc + b_ref[...]

    # manifold.normalize_points: projective rescaling of each row to unit L2
    # norm.  Padded columns are exactly zero, so they do not perturb the norm.
    sq = jnp.sum(acc * acc, axis=-1, keepdims=True)
    inv = pl.reciprocal(jnp.sqrt(sq) + EPS, approx=True)   # EUP slot, ~free
    o_ref[...] = (acc * (inv * scale_ref[0])).astype(o_ref.dtype)


def _hyperbolic_linear_matmul(x_p, wt_pad, b_pad, scale, *, tm=256):
    """out = normalize_points(x_p @ wt_pad + b_pad) * scale, one Pallas pass."""
    n, kp = x_p.shape
    op = wt_pad.shape[1]
    tm = min(tm, _round_up(n, 8))          # clamp for small N (keeps (8,128) rule)
    grid = (pl.cdiv(n, tm),)

    # VMEM budget: double-buffered x/out tiles + resident weight/bias
    # (double-buffered by default even though grid-invariant) + headroom.
    vmem_bytes = (2 * tm * kp + 2 * kp * op + 2 * op + 2 * tm * op) * 4 + (2 << 20)
    vmem_limit = int(min(max(vmem_bytes, 32 * 1024 * 1024), 64 * 1024 * 1024))

    return pl.pallas_call(
        _hyperbolic_linear_kernel,
        out_shape=jax.ShapeDtypeStruct((n, op), x_p.dtype),
        grid_spec=pltpu.PrefetchScalarGridSpec(
            num_scalar_prefetch=0,
            grid=grid,
            in_specs=[
                pl.BlockSpec(memory_space=pltpu.MemorySpace.SMEM),  # scale (1,)
                pl.BlockSpec((tm, kp), lambda i: (i, 0)),   # row tile of x
                pl.BlockSpec((kp, op), lambda i: (0, 0)),   # full W^T (resident)
                pl.BlockSpec((1, op), lambda i: (0, 0)),    # bias row
            ],
            out_specs=pl.BlockSpec((tm, op), lambda i: (i, 0)),
        ),
        compiler_params=pltpu.CompilerParams(
            dimension_semantics=("parallel",),
            vmem_limit_bytes=vmem_limit),
    )(scale, x_p, wt_pad, b_pad)


# ----------------------------------------------------------------------------
# Cross-ratio glue (touches only 4 rows — plain JAX)
# ----------------------------------------------------------------------------
# TODO(synk): compute_cross_ratio / restore_cross_ratio bodies are not in the
# provided snippet; reproduced from the UHG reference convention
# (distance-based cross-ratio, sqrt-scale restoration).
def compute_cross_ratio(a, b, c, d, eps=EPS):
    ac = jnp.linalg.norm(a - c)
    bd = jnp.linalg.norm(b - d)
    ad = jnp.linalg.norm(a - d)
    bc = jnp.linalg.norm(b - c)
    return (ac * bd) / (ad * bc + eps)


# ----------------------------------------------------------------------------
# Full HyperbolicLinear.forward
# ----------------------------------------------------------------------------
@functools.partial(jax.jit, static_argnames=("out_features",))
def hyperbolic_linear_forward(x, wt_pad, b_pad, out_features):
    n, k = x.shape
    kp, op = wt_pad.shape
    # Pad x's feature dim to match the padded weight (no-op when K % 128 == 0).
    x_p = x if k == kp else jnp.pad(x, ((0, 0), (0, kp - k)))

    has_cr = n > 3                         # static shape check (x.size(0) > 3)
    if has_cr:
        cr_initial = compute_cross_ratio(x[0], x[1], x[2], x[3])
        # Tiny 4-row pre-pass (plain JAX) reproduces the post-normalization
        # head rows so the uniform restore scale can be fused into the kernel
        # epilogue — avoids a second full HBM read+write pass over the output.
        head = x_p[:4] @ wt_pad + b_pad
        head = head / (jnp.sqrt(jnp.sum(head * head, -1, keepdims=True)) + EPS)
        cr_now = compute_cross_ratio(head[0], head[1], head[2], head[3])
        scale = jnp.sqrt(jnp.abs(cr_initial / (cr_now + EPS)))
    else:
        scale = jnp.float32(1.0)
    scale = jnp.reshape(scale, (1,)).astype(jnp.float32)

    out_pad = _hyperbolic_linear_matmul(x_p, wt_pad, b_pad, scale)
    return out_pad[:, :out_features]       # drop the zero padding columns


# ----------------------------------------------------------------------------
# Parameter init (xavier_uniform_ for weight, zeros for bias) + one-time prep
# ----------------------------------------------------------------------------
def init_params(key, in_features, out_features):
    bound = (6.0 / (in_features + out_features)) ** 0.5
    weight = jax.random.uniform(
        key, (out_features, in_features), jnp.float32, minval=-bound, maxval=bound)
    bias = jnp.zeros((out_features,), jnp.float32)
    return weight, bias


def prepare_params(weight, bias):
    """One-time layout plumbing (outside the forward hot path):
    transpose PyTorch-style [O, K] weight to [K, O] for the MXU and zero-pad
    K / O up to multiples of 128 so kernel loads/stores are lane-dense."""
    o, k = weight.shape
    kp, op = _round_up(k, _LANE), _round_up(o, _LANE)
    wt_pad = jnp.zeros((kp, op), weight.dtype).at[:k, :o].set(weight.T)
    b_pad = jnp.zeros((1, op), jnp.float32).at[0, :o].set(bias.astype(jnp.float32))
    return wt_pad, b_pad


if __name__ == "__main__":
    in_features, out_features, n = 32, 16, 8

    key = jax.random.PRNGKey(0)
    k_x, k_w = jax.random.split(key)
    x = jax.random.normal(k_x, (n, in_features), jnp.float32)
    weight, bias = init_params(k_w, in_features, out_features)
    wt_pad, b_pad = prepare_params(weight, bias)       # done once, not per call

    out = hyperbolic_linear_forward(x, wt_pad, b_pad, out_features)
    out = jax.block_until_ready(out)

    # Plain-JAX reference (same semantics as the PyTorch module).
    ref = x @ weight.T + bias
    ref = ref / (jnp.linalg.norm(ref, axis=-1, keepdims=True) + EPS)
    cr0 = compute_cross_ratio(x[0], x[1], x[2], x[3])
    crn = compute_cross_ratio(ref[0], ref[1], ref[2], ref[3])
    ref = ref * jnp.sqrt(jnp.abs(cr0 / (crn + EPS)))

    assert out.shape == (n, out_features), out.shape
    assert jnp.all(jnp.isfinite(out))
    assert jnp.allclose(out, ref, atol=1e-2, rtol=1e-2), \
        float(jnp.max(jnp.abs(out - ref)))
    print("KERNEL_OK")
</pallas_src>

<mosaic_0001>
module attributes {stable_mosaic.version = 11 : i64} {
  func.func @_hyperbolic_linear_kernel(%arg0: i32, %arg1: memref<1xf32, #tpu.memory_space<smem>>, %arg2: memref<8x128xf32, #tpu.memory_space<vmem>>, %arg3: memref<128x128xf32, #tpu.memory_space<vmem>>, %arg4: memref<1x128xf32, #tpu.memory_space<vmem>>, %arg5: memref<8x128xf32, #tpu.memory_space<vmem>>) attributes {dimension_semantics = [#tpu.dimension_semantics<parallel>], iteration_bounds = array<i64: 1>, scalar_prefetch = 0 : i64, scratch_operands = 0 : i64, tpu.core_type = #tpu.core_type<tc>, window_params = [{transform_indices = @transform_0, window_bounds = array<i64: 1>}, {transform_indices = @transform_1, window_bounds = array<i64: 8, 128>}, {pipeline_mode = #tpu.pipeline_mode<synchronous>, transform_indices = @transform_2, window_bounds = array<i64: 128, 128>}, {pipeline_mode = #tpu.pipeline_mode<synchronous>, transform_indices = @transform_3, window_bounds = array<i64: 1, 128>}, {transform_indices = @transform_4, window_bounds = array<i64: 8, 128>}]} {
    %c0 = arith.constant 0 : index
    %c0_0 = arith.constant 0 : index
    %0 = vector.load %arg2[%c0, %c0_0] : memref<8x128xf32, #tpu.memory_space<vmem>>, vector<8x128xf32>
    %c0_1 = arith.constant 0 : index
    %c0_2 = arith.constant 0 : index
    %1 = vector.load %arg3[%c0_1, %c0_2] : memref<128x128xf32, #tpu.memory_space<vmem>>, vector<128x128xf32>
    %cst = arith.constant dense<0.000000e+00> : vector<8x128xf32>
    %2 = tpu.matmul %0, %1, %cst {dimension_numbers = #tpu.dot_dimension_numbers<[1], [0], [0], [1], [0, 0, 1, 1], [], []>} : vector<8x128xf32>, vector<128x128xf32>, vector<8x128xf32> -> vector<8x128xf32>
    %c0_3 = arith.constant 0 : index
    %c0_4 = arith.constant 0 : index
    %3 = vector.load %arg4[%c0_3, %c0_4] : memref<1x128xf32, #tpu.memory_space<vmem>>, vector<1x128xf32>
    %4 = vector.broadcast %3 : vector<1x128xf32> to vector<8x128xf32>
    %5 = arith.addf %2, %4 : vector<8x128xf32>
    %6 = arith.mulf %5, %5 : vector<8x128xf32>
    %cst_5 = arith.constant dense<0.000000e+00> : vector<8xf32>
    %7 = vector.multi_reduction <add>, %6, %cst_5 [1] : vector<8x128xf32> to vector<8xf32>
    %8 = vector.shape_cast %7 : vector<8xf32> to vector<8x1xf32>
    %9 = math.sqrt %8 : vector<8x1xf32>
    %cst_6 = arith.constant 9.99999993E-9 : f32
    %10 = vector.broadcast %cst_6 : f32 to vector<8x1xf32>
    %11 = arith.addf %9, %10 : vector<8x1xf32>
    %12 = tpu.reciprocal %11 {approx = true} : vector<8x1xf32> -> vector<8x1xf32>
    %c0_7 = arith.constant 0 : index
    %13 = memref.load %arg1[%c0_7] : memref<1xf32, #tpu.memory_space<smem>>
    %14 = vector.broadcast %13 : f32 to vector<8x1xf32>
    %15 = arith.mulf %12, %14 : vector<8x1xf32>
    %16 = vector.broadcast %15 : vector<8x1xf32> to vector<8x128xf32>
    %17 = arith.mulf %5, %16 : vector<8x128xf32>
    %c0_8 = arith.constant 0 : index
    %c0_9 = arith.constant 0 : index
    %18 = vector.load %arg5[%c0_8, %c0_9] : memref<8x128xf32, #tpu.memory_space<vmem>>, vector<8x128xf32>
    tpu.vector_store %arg5[%c0_8, %c0_9], %17 {strides = array<i32>} : memref<8x128xf32, #tpu.memory_space<vmem>>, vector<8x128xf32>,
    return
  }
  func.func @transform_0(%arg0: i32) -> i32 {
    %c0_i32 = arith.constant 0 : i32
    %c0_i32_0 = arith.constant 0 : i32
    return %c0_i32 : i32
  }
  func.func @transform_1(%arg0: i32) -> (i32, i32) {
    %c0_i32 = arith.constant 0 : i32
    %c0_i32_0 = arith.constant 0 : i32
    return %arg0, %c0_i32 : i32, i32
  }
  func.func @transform_2(%arg0: i32) -> (i32, i32) {
    %c0_i32 = arith.constant 0 : i32
    %c0_i32_0 = arith.constant 0 : i32
    %c0_i32_1 = arith.constant 0 : i32
    return %c0_i32, %c0_i32_0 : i32, i32
  }
  func.func @transform_3(%arg0: i32) -> (i32, i32) {
    %c0_i32 = arith.constant 0 : i32
    %c0_i32_0 = arith.constant 0 : i32
    %c0_i32_1 = arith.constant 0 : i32
    return %c0_i32, %c0_i32_0 : i32, i32
  }
  func.func @transform_4(%arg0: i32) -> (i32, i32) {
    %c0_i32 = arith.constant 0 : i32
    %c0_i32_0 = arith.constant 0 : i32
    return %arg0, %c0_i32 : i32, i32
  }
}

</mosaic_0001>

<bundles_post_ra>
// kernel: hyperbolic_linear_forward.1
= control target key start
LH: loop header
LB: loop body
LE: loop exit
PB: predicated region body
PF: predicated region fallthrough
CT: control target
= control target key end

     0   :  { %s216_s0 = inlined_call_operand.<no memory space> [shape: f32[1], index: 0, kind: input, shape index: {}]   ;;  %s217_s1 = inlined_call_operand.vmem [shape: f32[8,128], index: 1, kind: input, shape index: {}]   ;;  %s218_s2 = inlined_call_operand.vmem [shape: f32[128,128], index: 2, kind: input, shape index: {}]   ;;  %s219_s3 = inlined_call_operand.vmem [shape: f32[1,128], index: 3, kind: input, shape index: {}]   ;;  %s220_s4 = inlined_call_operand.hbm [shape: f32[8,128], index: 4, kind: output, shape index: {}]  }
   0x1   :  { %v35_v0 = vld [vmem:[%s218_s2 + $0x78] sm:$0xff]  ;;  %v34_v1 = vld [vmem:[%s218_s2 + $0x70] sm:$0xff]  ;;  %v33_v2 = vld [vmem:[%s218_s2 + $0x68] sm:$0xff] }
   0x2   :  { %40 = vmatpush.msra.mxu0 %v35_v0  ;;  %v32_v3 = vld [vmem:[%s218_s2 + $0x60] sm:$0xff]  ;;  %v31_v4 = vld [vmem:[%s218_s2 + $0x58] sm:$0xff] }
   0x4   :  { %41 = vmatpush.msra.mxu0 %v34_v1 }
   0x6   :  { %42 = vmatpush.msra.mxu0 %v33_v2 }
   0x7   :  { %10 = vsyncpa [#allocation4], 0  ;;  %v30_v5 = vld [vmem:[%s218_s2 + $0x50] sm:$0xff]  ;;  %v29_v6 = vld [vmem:[%s218_s2 + $0x48] sm:$0xff]  ;;  %v78_v33 = vstv %s216_s0  ;;  %s89_s28 = sshll.u32 %s220_s4, 4  ;;  %s90_s28 = int_to_ptr.hbm [resolvable:$true] %s89_s28 }
   0x8   :  { %43 = vmatpush.msra.mxu0 %v32_v3  ;;  %v28_v7 = vld [vmem:[%s218_s2 + $0x40] sm:$0xff]  ;;  %v27_v8 = vld [vmem:[%s218_s2 + $0x38] sm:$0xff]  ;;  %v26_v9 = vld [vmem:[%s218_s2 + $0x30] sm:$0xff] }
   0x9   :  { %v25_v10 = vld [vmem:[%s218_s2 + $0x28] sm:$0xff]  ;;  %v24_v11 = vld [vmem:[%s218_s2 + $0x20] sm:$0xff]  ;;  %v23_v12 = vld [vmem:[%s218_s2 + $0x18] sm:$0xff] }
   0xa   :  { %44 = vmatpush.msra.mxu0 %v31_v4  ;;  %v22_v13 = vld [vmem:[%s218_s2 + $0x10] sm:$0xff]  ;;  %v21_v14 = vld [vmem:[%s218_s2 + $0x8] sm:$0xff]  ;;  %v20_v15 = vld [vmem:[%s218_s2] sm:$0xff] }
   0xb   :  { %v19_v16 = vld [vmem:[%s217_s1] sm:$0xff] }
   0xc   :  { %45 = vmatpush.msra.mxu0 %v30_v5  ;;  %v99_v17 = vld [vmem:[%s219_s3] ss:$0 sm:$0xff]  ;;  %s130_s3 = smov [#allocation3]  }
   0xd   :  { %s87_s25 = sshll.u32 %s130_s3, 4  ;;  %s88_s25 = int_to_ptr.vmem [resolvable:$true] %s87_s25 }
   0xe   :  { %46 = vmatpush.msra.mxu0 %v29_v6 }
  0x10   :  { %47 = vmatpush.msra.mxu0 %v28_v7 }
  0x12   :  { %48 = vmatpush.msra.mxu0 %v27_v8 }
  0x14   :  { %49 = vmatpush.msra.mxu0 %v26_v9 }
  0x16   :  { %50 = vmatpush.msra.mxu0 %v25_v10 }
  0x18   :  { %51 = vmatpush.msra.mxu0 %v24_v11 }
  0x1a   :  { %52 = vmatpush.msra.mxu0 %v23_v12 }
  0x1c   :  { %53 = vmatpush.msra.mxu0 %v22_v13 }
  0x1e   :  { %54 = vmatpush.msra.mxu0 %v21_v14 }
  0x20   :  { %55 = vmatpush.msra.mxu0 %v20_v15 }
  0x21   :  { %56 = vmatmul.f32.vlgmr.msra.gmra.mxu0 %v19_v16 }
  0x9e   :  { %v57_v18 = vpop.f32.mrf.mxu0 }
  0x9f   :  { %v58_v19 = vadd.f32 %v99_v17, %v57_v18 }
  0xa1   :  { %v60_v20 = vmul.f32 %v58_v19, %v58_v19 }
  0xa3   :  { %61 = vadd.xlane.f32.xlu0 %v60_v20 }
 0x116   :  { %v62_v21 = vpop.xlane.xlu0 %61 }
 0x117   :  { %100 = vrsqrt.f32 %v62_v21  ;;  %vm70_vm0 = vcmp.eq.f32.partialorder %v62_v21, inf  ;;  %v73_v29 = vand.u32 2147483648, %v62_v21  ;;  %vm72_vm1 = vcmp.eq.f32.partialorder %v62_v21, 0.0 }
 0x11d   :  { %v101_v22 = vpop.eup %100 }
 0x11e   :  { %v64_v23 = vmul.f32 %v101_v22, %v62_v21 }
 0x120   :  { %v65_v24 = vmul.f32 %v101_v22, %v64_v23 }
 0x122   :  { %v66_v25 = vmul.f32 0.5, %v65_v24 }
 0x124   :  { %v67_v26 = vsub.f32 1.5, %v66_v25 }
 0x126   :  { %v68_v27 = vmul.f32 %v101_v22, %v67_v26 }
 0x128   :  { %v69_v28 = vmul.f32 %v68_v27, %v62_v21 }
 0x12a   :  { %v71_v30 = vsel %vm70_vm0, %v62_v21, %v69_v28 }
 0x12b   :  { %v74_v31 = vsel %vm72_vm1, %v73_v29, %v71_v30 }
 0x12c   :  { %v75_v32 = vadd.f32 1e-08, %v74_v31 }
 0x12e   :  { %102 = vrcp.f32 %v75_v32 }
 0x134   :  { %v103_v34 = vpop.eup %102 }
 0x135   :  { %v79_v35 = vmul.f32 %v103_v34, %v78_v33 }
 0x137   :  { %v80_v36 = vmul.f32 %v79_v35, %v58_v19 }
 0x139   :  { %81 = vst [vmem:[#allocation3] sm:$0xff] %v80_v36 }
 0x13a   :  { %92 = dma.vmem_to_hbm [thread:$0]  %s88_s25, 128, %s90_s28, [#allocation4]  }
 0x13b   :  { %128 = dma.done.wait [#allocation4], 128  }
 0x13c   :  { %129 = vsyncadd [#allocation4], 4294967168 }
 0x13d   :  { %97 = vsyncpa [#allocation4], 1 }

</bundles_post_ra>
